<compile_context>
chip_gen: v7x
topology: tpu7x:2x2x1
jax: 0.10.0
libtpu: 0.0.40
codegen_flags: <defaults>
</compile_context>

<pallas_src>
import math
from functools import partial

import jax
import jax.numpy as jnp
from jax.experimental import pallas as pl
from jax.experimental.pallas import tpu as pltpu


def _round_up(x, m):
    return ((x + m - 1) // m) * m


def _recon_loss_kernel(recon_ref, target_ref, w3_ref, segw_ref, out_ref, *, k):
    """One row tile (k logical (seq,batch) rows packed per kernel row).

    recon_ref / target_ref : [tile_np, k*D]  native dtype (upcast in-kernel)
    w3_ref                 : [tile_np, 3*k]  f32, col m*k+r = (mask==0)*umask^2/(3*dim_m)
    segw_ref               : [k*D, 3*k]      bf16 0/1 block-diagonal segment indicator
    out_ref                : [tile_np, k]    f32 per-logical-row loss
    """
    diff = recon_ref[...].astype(jnp.float32) - target_ref[...].astype(jnp.float32)
    sq = diff * diff                                   # MSELoss(reduction='none'); umask^2 folded into w3

    # Segment sums via TWO default-precision bf16 MXU passes (hi/lo split of sq).
    # segw entries are exactly 0/1 in bf16, so accuracy is ~f32 at 1/3 the MXU work
    # of the previous Precision.HIGHEST dot.
    sq_hi = sq.astype(jnp.bfloat16)
    sq_lo = (sq - sq_hi.astype(jnp.float32)).astype(jnp.bfloat16)
    seg = segw_ref[...]
    sums = (jnp.dot(sq_hi, seg, preferred_element_type=jnp.float32)
            + jnp.dot(sq_lo, seg, preferred_element_type=jnp.float32))   # [tile, 3k]

    weighted = sums * w3_ref[...]                      # per-row modality weights (VPU)
    # combine the 3 modalities of each packed logical row (lane groups of width k)
    out_ref[...] = weighted[:, 0:k] + weighted[:, k:2 * k] + weighted[:, 2 * k:3 * k]


def _choose_tile_np(np_rows, k, D, itemsize, sub_mult):
    """Packed rows per grid step from a lane-padded VMEM model of every
    double-buffered stream; target >=8 MiB HBM reads/step, <=36 MiB pipeline VMEM."""
    if np_rows <= sub_mult:
        return np_rows                              # single full-extent block
    pad_l = lambda n: _round_up(n, 128)             # lane padding of a block's last dim
    per_row = (2 * pad_l(k * D) * itemsize          # recon + target tiles
               + pad_l(3 * k) * 4                   # w3 tile (f32)
               + pad_l(k) * 4)                      # out tile (f32)
    segw_bytes = 2 * (k * D) * pad_l(3 * k) * 2     # resident bf16 constant (double-buffered)
    vmem_budget = 36 * 1024 * 1024
    rows_vmem = max(sub_mult, (vmem_budget - segw_bytes) // (2 * per_row))
    rows_payload = max(sub_mult, (8 * 1024 * 1024) // (2 * k * D * itemsize))
    t = min(rows_vmem, rows_payload, np_rows)
    t = max(sub_mult, (t // sub_mult) * sub_mult)
    # keep >=2 grid steps when possible so the "parallel" axis can split across
    # v7x's two TensorCores
    if -(-np_rows // t) < 2 and np_rows >= 2 * sub_mult:
        t = max(sub_mult, ((np_rows // 2) // sub_mult) * sub_mult)
    return t


def masked_batch_recon_loss(recon_input, target_input, input_mask, umask,
                            adim, tdim, vdim):
    """
    recon_input  : [seqlen, batch, dim]
    target_input : [seqlen, batch, dim]
    input_mask   : [seqlen, batch, 3]
    umask        : [batch, seqlen]
    returns      : loss_batch [batch, seqlen]
    """
    S, B, D = recon_input.shape
    assert D == adim + tdim + vdim
    assert adim > 0 and tdim > 0 and vdim > 0, "zero-sized modality -> inf/nan (as in PyTorch)"
    N = S * B
    dtype = recon_input.dtype
    itemsize = jnp.dtype(dtype).itemsize
    sub_mult = max(8, 32 // itemsize)               # sublane packing: 8 f32 / 16 bf16 / 32 int8

    # ---- row packing factor: smallest k with (k*D) % 128 == 0; pure reshape, no copies.
    k = 128 // math.gcd(D, 128)
    if N % k != 0:
        k = 1                                       # fallback: unpacked (lane-padded) but copy-free
    np_rows = N // k
    kd = k * D

    tile_np = _choose_tile_np(np_rows, k, D, itemsize, sub_mult)
    num_tiles = -(-np_rows // tile_np)              # ragged last tile handled natively by Pallas

    recon_p = recon_input.reshape(np_rows, kd)      # free reshapes of contiguous data
    target_p = target_input.reshape(np_rows, kd)

    # ---- per-row per-modality weight: (mask==0) * umask^2 * 1/(3*dim_m), packed to the
    # (modality-major, row-minor) column order that matches segw.  ~3% of HBM traffic.
    um = jnp.transpose(umask, (1, 0)).reshape(N, 1).astype(jnp.float32)
    inv3 = jnp.array([1.0 / (3.0 * adim), 1.0 / (3.0 * tdim), 1.0 / (3.0 * vdim)],
                     jnp.float32)
    w3 = (input_mask.reshape(N, 3) == 0).astype(jnp.float32) * (um * um) * inv3[None, :]
    w3p = jnp.transpose(w3.reshape(np_rows, k, 3), (0, 2, 1)).reshape(np_rows, 3 * k)

    # ---- constant block-diagonal 0/1 segment indicator (exact in bf16):
    #   segw[r*D + j, m*k + r] = 1  iff feature j belongs to modality m.
    col = jnp.arange(D)
    seg_id = jnp.where(col < adim, 0, jnp.where(col < adim + tdim, 1, 2))
    ind = (seg_id[:, None] == jnp.arange(3)[None, :]).astype(jnp.bfloat16)        # [D, 3]
    eye_k = jnp.eye(k, dtype=jnp.bfloat16)
    segw = (eye_k[:, None, None, :] * ind[None, :, :, None]).reshape(kd, 3 * k)   # [kD, 3k]

    out = pl.pallas_call(
        partial(_recon_loss_kernel, k=k),
        out_shape=jax.ShapeDtypeStruct((np_rows, k), jnp.float32),
        grid=(num_tiles,),
        in_specs=[
            pl.BlockSpec((tile_np, kd), lambda i: (i, 0)),
            pl.BlockSpec((tile_np, kd), lambda i: (i, 0)),
            pl.BlockSpec((tile_np, 3 * k), lambda i: (i, 0)),
            pl.BlockSpec((kd, 3 * k), lambda i: (0, 0)),
        ],
        out_specs=pl.BlockSpec((tile_np, k), lambda i: (i, 0)),
        compiler_params=pltpu.CompilerParams(
            dimension_semantics=("parallel",),      # v7x: shard row tiles across 2 TCs
            vmem_limit_bytes=48 * 1024 * 1024,      # < v7x 64 MiB physical, > v5e 16 MiB default
        ),
    )(recon_p, target_p, w3p, segw)

    # out[g, r] is the loss of flat row g*k + r == (seq*B + batch) index.
    loss_batch = jnp.transpose(out.reshape(S, B), (1, 0))   # [batch, seqlen]
    return loss_batch


def _reference(recon, target, mask, umask, adim, tdim, vdim):
    # Pure-JAX mirror of the PyTorch forward, for verification.
    A_rec, L_rec, V_rec = (recon[:, :, :adim],
                           recon[:, :, adim:adim + tdim],
                           recon[:, :, adim + tdim:])
    A_full, L_full, V_full = (target[:, :, :adim],
                              target[:, :, adim:adim + tdim],
                              target[:, :, adim + tdim:])
    A_miss = (mask[:, :, 0] == 0).astype(jnp.float32)
    L_miss = (mask[:, :, 1] == 0).astype(jnp.float32)
    V_miss = (mask[:, :, 2] == 0).astype(jnp.float32)
    um = jnp.transpose(umask, (1, 0))[:, :, None]
    l1 = ((A_rec * um - A_full * um) ** 2 * A_miss[:, :, None]).mean(-1)
    l2 = ((L_rec * um - L_full * um) ** 2 * L_miss[:, :, None]).mean(-1)
    l3 = ((V_rec * um - V_full * um) ** 2 * V_miss[:, :, None]).mean(-1)
    return ((l1 + l2 + l3) / 3.0).T


if __name__ == "__main__":
    key = jax.random.PRNGKey(0)

    # --- case 1: packed fast path (D=48 -> k=8, N % k == 0) ---
    seqlen, batch = 8, 2
    adim, tdim, vdim = 16, 16, 16
    dim = adim + tdim + vdim
    k1, k2, k3, k4 = jax.random.split(key, 4)
    recon = jax.random.normal(k1, (seqlen, batch, dim), dtype=jnp.float32)
    target = jax.random.normal(k2, (seqlen, batch, dim), dtype=jnp.float32)
    input_mask = jax.random.bernoulli(k3, 0.5, (seqlen, batch, 3)).astype(jnp.float32)
    umask = jax.random.bernoulli(k4, 0.8, (batch, seqlen)).astype(jnp.float32)

    loss_batch = masked_batch_recon_loss(recon, target, input_mask, umask,
                                         adim, tdim, vdim)
    jax.block_until_ready(loss_batch)
    ref = _reference(recon, target, input_mask, umask, adim, tdim, vdim)
    assert loss_batch.shape == (batch, seqlen)
    assert jnp.allclose(loss_batch, ref, atol=1e-5, rtol=1e-5)

    # --- case 2: unpacked fallback + ragged last tile (N % k != 0, N % tile != 0) ---
    seqlen2, batch2 = 7, 3
    adim2, tdim2, vdim2 = 5, 9, 10
    dim2 = adim2 + tdim2 + vdim2
    k5, k6, k7, k8 = jax.random.split(jax.random.PRNGKey(1), 4)
    recon2 = jax.random.normal(k5, (seqlen2, batch2, dim2), dtype=jnp.float32)
    target2 = jax.random.normal(k6, (seqlen2, batch2, dim2), dtype=jnp.float32)
    mask2 = jax.random.bernoulli(k7, 0.5, (seqlen2, batch2, 3)).astype(jnp.float32)
    umask2 = jax.random.bernoulli(k8, 0.8, (batch2, seqlen2)).astype(jnp.float32)

    loss_batch2 = masked_batch_recon_loss(recon2, target2, mask2, umask2,
                                          adim2, tdim2, vdim2)
    jax.block_until_ready(loss_batch2)
    ref2 = _reference(recon2, target2, mask2, umask2, adim2, tdim2, vdim2)
    assert loss_batch2.shape == (batch2, seqlen2)
    assert jnp.allclose(loss_batch2, ref2, atol=1e-5, rtol=1e-5)

    print("KERNEL_OK")
</pallas_src>

<mosaic_0001>
module attributes {stable_mosaic.version = 11 : i64} {
  func.func @_recon_loss_kernel(%arg0: i32, %arg1: memref<2x384xf32, #tpu.memory_space<vmem>>, %arg2: memref<2x384xf32, #tpu.memory_space<vmem>>, %arg3: memref<2x24xf32, #tpu.memory_space<vmem>>, %arg4: memref<384x24xbf16, #tpu.memory_space<vmem>>, %arg5: memref<2x8xf32, #tpu.memory_space<vmem>>) attributes {dimension_semantics = [#tpu.dimension_semantics<parallel>], iteration_bounds = array<i64: 1>, scalar_prefetch = 0 : i64, scratch_operands = 0 : i64, tpu.core_type = #tpu.core_type<tc>, window_params = [{transform_indices = @transform_0, window_bounds = array<i64: 2, 384>}, {transform_indices = @transform_1, window_bounds = array<i64: 2, 384>}, {transform_indices = @transform_2, window_bounds = array<i64: 2, 24>}, {pipeline_mode = #tpu.pipeline_mode<synchronous>, transform_indices = @transform_3, window_bounds = array<i64: 384, 24>}, {transform_indices = @transform_4, window_bounds = array<i64: 2, 8>}]} {
    %c0 = arith.constant 0 : index
    %c0_0 = arith.constant 0 : index
    %0 = vector.load %arg1[%c0, %c0_0] : memref<2x384xf32, #tpu.memory_space<vmem>>, vector<2x384xf32>
    %c0_1 = arith.constant 0 : index
    %c0_2 = arith.constant 0 : index
    %1 = vector.load %arg2[%c0_1, %c0_2] : memref<2x384xf32, #tpu.memory_space<vmem>>, vector<2x384xf32>
    %2 = arith.subf %0, %1 : vector<2x384xf32>
    %3 = arith.mulf %2, %2 : vector<2x384xf32>
    %4 = arith.truncf %3 : vector<2x384xf32> to vector<2x384xbf16>
    %5 = arith.extf %4 : vector<2x384xbf16> to vector<2x384xf32>
    %6 = arith.subf %3, %5 : vector<2x384xf32>
    %7 = arith.truncf %6 : vector<2x384xf32> to vector<2x384xbf16>
    %c0_3 = arith.constant 0 : index
    %c0_4 = arith.constant 0 : index
    %8 = vector.load %arg4[%c0_3, %c0_4] : memref<384x24xbf16, #tpu.memory_space<vmem>>, vector<384x24xbf16>
    %cst = arith.constant dense<0.000000e+00> : vector<2x24xf32>
    %9 = tpu.matmul %4, %8, %cst {dimension_numbers = #tpu.dot_dimension_numbers<[1], [0], [0], [1], [0, 0, 1, 1], [], []>} : vector<2x384xbf16>, vector<384x24xbf16>, vector<2x24xf32> -> vector<2x24xf32>
    %cst_5 = arith.constant dense<0.000000e+00> : vector<2x24xf32>
    %10 = tpu.matmul %7, %8, %cst_5 {dimension_numbers = #tpu.dot_dimension_numbers<[1], [0], [0], [1], [0, 0, 1, 1], [], []>} : vector<2x384xbf16>, vector<384x24xbf16>, vector<2x24xf32> -> vector<2x24xf32>
    %11 = arith.addf %9, %10 : vector<2x24xf32>
    %c0_6 = arith.constant 0 : index
    %c0_7 = arith.constant 0 : index
    %12 = vector.load %arg3[%c0_6, %c0_7] : memref<2x24xf32, #tpu.memory_space<vmem>>, vector<2x24xf32>
    %13 = arith.mulf %11, %12 : vector<2x24xf32>
    %14 = vector.extract_strided_slice %13 {offsets = [0, 0], sizes = [2, 8], strides = [1, 1]} : vector<2x24xf32> to vector<2x8xf32>
    %15 = vector.extract_strided_slice %13 {offsets = [0, 8], sizes = [2, 8], strides = [1, 1]} : vector<2x24xf32> to vector<2x8xf32>
    %16 = arith.addf %14, %15 : vector<2x8xf32>
    %17 = vector.extract_strided_slice %13 {offsets = [0, 16], sizes = [2, 8], strides = [1, 1]} : vector<2x24xf32> to vector<2x8xf32>
    %18 = arith.addf %16, %17 : vector<2x8xf32>
    %c0_8 = arith.constant 0 : index
    %c0_9 = arith.constant 0 : index
    %19 = vector.load %arg5[%c0_8, %c0_9] : memref<2x8xf32, #tpu.memory_space<vmem>>, vector<2x8xf32>
    tpu.vector_store %arg5[%c0_8, %c0_9], %18 {strides = array<i32>} : memref<2x8xf32, #tpu.memory_space<vmem>>, vector<2x8xf32>,
    return
  }
  func.func @transform_0(%arg0: i32) -> (i32, i32) {
    %c0_i32 = arith.constant 0 : i32
    %c0_i32_0 = arith.constant 0 : i32
    return %arg0, %c0_i32 : i32, i32
  }
  func.func @transform_1(%arg0: i32) -> (i32, i32) {
    %c0_i32 = arith.constant 0 : i32
    %c0_i32_0 = arith.constant 0 : i32
    return %arg0, %c0_i32 : i32, i32
  }
  func.func @transform_2(%arg0: i32) -> (i32, i32) {
    %c0_i32 = arith.constant 0 : i32
    %c0_i32_0 = arith.constant 0 : i32
    return %arg0, %c0_i32 : i32, i32
  }
  func.func @transform_3(%arg0: i32) -> (i32, i32) {
    %c0_i32 = arith.constant 0 : i32
    %c0_i32_0 = arith.constant 0 : i32
    %c0_i32_1 = arith.constant 0 : i32
    return %c0_i32, %c0_i32_0 : i32, i32
  }
  func.func @transform_4(%arg0: i32) -> (i32, i32) {
    %c0_i32 = arith.constant 0 : i32
    %c0_i32_0 = arith.constant 0 : i32
    return %arg0, %c0_i32 : i32, i32
  }
}

</mosaic_0001>

<bundles_post_ra>
// kernel: tpu_custom_call.1
= control target key start
LH: loop header
LB: loop body
LE: loop exit
PB: predicated region body
PF: predicated region fallthrough
CT: control target
= control target key end

     0   :  { %v658_v1 = vmov 0.0   ;;  %vm659_vm0 = vmmov 0   ;;  %v28_v20 = vlaneseq  ;;  %v660_v27 = vmov 1983009808   ;;  %s894_s0 = inlined_call_operand.vmem [shape: f32[2,384], index: 0, kind: input, shape index: {}]   ;;  %s895_s1 = inlined_call_operand.vmem [shape: f32[2,384], index: 1, kind: input, shape index: {}]   ;;  %s896_s2 = inlined_call_operand.vmem [shape: f32[2,24], index: 2, kind: input, shape index: {}]   ;;  %s897_s3 = inlined_call_operand.vmem [shape: bf16[384,24], index: 3, kind: input, shape index: {}]   ;;  %s898_s4 = inlined_call_operand.hbm [shape: f32[2,8], index: 4, kind: output, shape index: {}]  }
   0x1   :  { %v692_v0 = vld [vmem:[%s897_s3 + $0x40] sm:$0xff]   ;;  %558 = vmatprep.subr.bf16.mxu1 %v658_v1  ;;  %574 = vmatprep.mubr.msk.bf16.mxu1 %vm659_vm0, %v658_v1  ;;  %v712_v4 = vld [vmem:[%s897_s3 + $0x48] sm:$0xff]   ;;  %v730_v7 = vld [vmem:[%s897_s3 + $0x50] sm:$0xff]   ;;  %v26_v28 = vunpack.c.l.s4 %v660_v27 }
   0x2   :  { %v698_v2 = vld [vmem:[%s897_s3 + $0x80] sm:$0xff]   ;;  %496 = vmatprep.subr.bf16.mxu0 %v692_v0  ;;  %v719_v5 = vld [vmem:[%s897_s3 + $0x88] sm:$0xff]   ;;  %v736_v8 = vld [vmem:[%s897_s3 + $0x90] sm:$0xff]   ;;  %v29_v29 = vshrl.u32 %v28_v20, 7 }
   0x3   :  { %v704_v3 = vld [vmem:[%s897_s3] sm:$0xff]   ;;  %559 = vmatpush3.bf16.msra.mxu1 %v698_v2  ;;  %v725_v6 = vld [vmem:[%s897_s3 + $0x8] sm:$0xff]   ;;  %v743_v9 = vld [vmem:[%s897_s3 + $0x10] sm:$0xff]  }
   0x4   :  { %497 = vmatpush3.bf16.msra.mxu0 %v704_v3  ;;  %560 = vmatprep.subr.bf16.mxu1 %v658_v1  ;;  %v749_v10 = vld [vmem:[%s897_s3 + $0x58] sm:$0xff]   ;;  %v768_v13 = vld [vmem:[%s897_s3 + $0x60] sm:$0xff]   ;;  %v787_v16 = vld [vmem:[%s897_s3 + $0x68] sm:$0xff]  }
   0x5   :  { %498 = vmatprep.subr.bf16.mxu0 %v712_v4  ;;  %v755_v11 = vld [vmem:[%s897_s3 + $0x98] sm:$0xff]   ;;  %v774_v14 = vld [vmem:[%s897_s3 + $0xa0] sm:$0xff]   ;;  %v793_v17 = vld [vmem:[%s897_s3 + $0xa8] sm:$0xff]  }
   0x6   :  { %v762_v12 = vld [vmem:[%s897_s3 + $0x18] sm:$0xff]   ;;  %v781_v15 = vld [vmem:[%s897_s3 + $0x20] sm:$0xff]   ;;  %v800_v18 = vld [vmem:[%s897_s3 + $0x28] sm:$0xff]  }
   0x7   :  { %561 = vmatpush3.bf16.msra.mxu1 %v719_v5  ;;  %v806_v19 = vld [vmem:[%s897_s3 + $0x70] sm:$0xff]   ;;  %v19_v23 = vld [vmem:[%s894_s0] sm:$0x3f]  ;;  %v831_v25 = vld [vmem:[%s897_s3 + $0x78] sm:$0xff]  }
   0x8   :  { %499 = vmatpush3.bf16.msra.mxu0 %v725_v6  ;;  %562 = vmatprep.subr.bf16.mxu1 %v658_v1  ;;  %v811_v21 = vld [vmem:[%s897_s3 + $0xb0] sm:$0xff]   ;;  %v20_v24 = vld [vmem:[%s895_s1] sm:$0x3f] }
   0x9   :  { %500 = vmatprep.subr.bf16.mxu0 %v730_v7  ;;  %v817_v22 = vld [vmem:[%s897_s3 + $0x30] sm:$0xff]   ;;  %v21_v26 = vsub.f32 %v19_v23, %v20_v24 }
   0xb   :  { %563 = vmatpush3.bf16.msra.mxu1 %v736_v8 }
   0xc   :  { %501 = vmatpush3.bf16.msra.mxu0 %v743_v9  ;;  %564 = vmatprep.subr.bf16.mxu1 %v658_v1 }
   0xd   :  { %502 = vmatprep.subr.bf16.mxu0 %v749_v10 }
   0xf   :  { %565 = vmatpush3.bf16.msra.mxu1 %v755_v11 }
  0x10   :  { %503 = vmatpush3.bf16.msra.mxu0 %v762_v12  ;;  %566 = vmatprep.subr.bf16.mxu1 %v658_v1 }
  0x11   :  { %504 = vmatprep.subr.bf16.mxu0 %v768_v13 }
  0x13   :  { %567 = vmatpush3.bf16.msra.mxu1 %v774_v14 }
  0x14   :  { %505 = vmatpush3.bf16.msra.mxu0 %v781_v15  ;;  %568 = vmatprep.subr.bf16.mxu1 %v658_v1 }
  0x15   :  { %506 = vmatprep.subr.bf16.mxu0 %v787_v16 }
  0x17   :  { %569 = vmatpush3.bf16.msra.mxu1 %v793_v17 }
  0x18   :  { %507 = vmatpush3.bf16.msra.mxu0 %v800_v18  ;;  %570 = vmatprep.subr.bf16.mxu1 %v658_v1 }
  0x19   :  { %508 = vmatprep.subr.bf16.mxu0 %v806_v19 }
  0x1a   :  { %9 = vsyncpa [#allocation3], 0  ;;  %v837_v30 = vld [vmem:[%s897_s3 + $0xb8] sm:$0xff]   ;;  %v22_v31 = vmul.f32 %v21_v26, %v21_v26  ;;  %v27_v32 = vunpack.c.0.s8 %v26_v28  ;;  %s661_s14 = smov 120   ;;  %s662_s15 = smov 112   ;;  %vm456_vm1 = vcmask 58368  }
  0x1b   :  { %571 = vmatpush3.bf16.msra.mxu1 %v811_v21  ;;  %v633_v33 = vld [vmem:[%s897_s3 + $0x38] sm:$0xff]   ;;  %s663_s16 = smov [#allocation2]  }
  0x1c   :  { %509 = vmatpush3.bf16.msra.mxu0 %v817_v22  ;;  %572 = vmatprep.subr.bf16.mxu1 %v658_v1  ;;  %v24_v34 = vcombine.high %v22_v31, %v22_v31  ;;  %v30_v35 = vsub.s32 %v27_v32, %v29_v29  ;;  %s464_s17 = sshll.u32 %s663_s16, 4  ;;  %s465_s17 = int_to_ptr.vmem [resolvable:$true] %s464_s17 }
  0x1d   :  { %510 = vmatprep.subr.bf16.mxu0 %v831_v25  ;;  %s634_s18 = scalar_lea.vmem %s465_s17, 32  ;;  %p639_p1 = scmp.lt.s32.totalorder %s465_s17, %s465_s17 }
  0x1e   :  { %v31_v36 = vrot.slane %v22_v31, %v30_v35  ;;  %v38_v37 = vrot.slane %v24_v34, %v30_v35  ;;  %p635_p0 = scmp.ne.s32.totalorder %s465_s17, %s634_s18  ;;  %p640_p2 = scmp.lt.s32.totalorder %s634_s18, %s634_s18 }
  0x1f   :  { %573 = vmatpush3.bf16.msra.mxu1 %v837_v30 }
  0x20   :  { %511 = vmatpush3.bf16.msra.mxu0 %v633_v33  ;;  %578 = vmatprep.subr.bf16.mxu1 %v658_v1  ;;  %v39_v38 = vcombine.high %v31_v36, %v31_v36  ;;  %v43_v39 = vpack.c.bf16 %v31_v36, %v31_v36  ;;  %v45_v40 = vpack.c.bf16 %v38_v37, %v38_v37  ;;  %p641_p3 = por %p640_p2, %p639_p1 }
  0x21   :  { %527 = vmatprep.subr.bf16.mxu0 %v692_v0 }
  0x22   :  { %v44_v41 = vpack.c.bf16 %v39_v38, %v39_v38  ;;  %v46_v42 = vunpack.c.l.bf16 %v43_v39  ;;  %v48_v43 = vunpack.c.l.bf16 %v45_v40  ;;  %p642_p4 = pnand %p641_p3, %p635_p0 }
  0x24   :  { %v47_v44 = vunpack.c.l.bf16 %v44_v41  ;;  %v66_v46 = vrot.slane %v48_v43, %v30_v35 }
  0x26   :  { %v52_v45 = vcombine.low %v46_v42, %v47_v44 }
  0x28   :  { %v59_v47 = vrot.slane %v52_v45, %v30_v35 }
  0x2a   :  { %v67_v48 = vcombine.low %v59_v47, %v66_v46 }
  0x2c   :  { %v69_v49 = vsub.f32 %v22_v31, %v67_v48 }
  0x2e   :  { %v78_v50 = vrot.slane %v69_v49, %v30_v35  ;;  %v71_v51 = vcombine.high %v69_v49, %v69_v49 }
  0x30   :  { %v86_v52 = vcombine.high %v78_v50, %v78_v50  ;;  %v85_v53 = vrot.slane %v71_v51, %v30_v35  ;;  %v90_v54 = vpack.c.bf16 %v78_v50, %v78_v50 }
  0x32   :  { %v91_v55 = vpack.c.bf16 %v86_v52, %v86_v52  ;;  %v92_v56 = vpack.c.bf16 %v85_v53, %v85_v53 }
  0x34   :  { %317 = vmatprep.mubr.bf16.mxu0 %v91_v55  ;;  %575 = vmatmul.mubr.bf16.vlgmr.msra.gmra.mrb[0].mxu1 %v92_v56 }
  0x35   :  { %318 = vmatmul.mubr.bf16.vlgmr.msra.gmra.mrb[0].mxu0 %v90_v54  ;;  %579 = vmatpush3.bf16.msra.mxu1 %v698_v2 }
  0x36   :  { %528 = vmatpush3.bf16.msra.mxu0 %v704_v3  ;;  %580 = vmatprep.subr.bf16.mxu1 %v658_v1 }
  0x37   :  { %529 = vmatprep.subr.bf16.mxu0 %v712_v4  ;;  %594 = vmatprep.mubr.msk.bf16.mxu1 %vm659_vm0, %v658_v1 }
  0x38   :  { %397 = vmatprep.mubr.bf16.mxu0 %v44_v41 }
  0x39   :  { %581 = vmatpush3.bf16.msra.mxu1 %v719_v5 }
  0x3a   :  { %530 = vmatpush3.bf16.msra.mxu0 %v725_v6  ;;  %582 = vmatprep.subr.bf16.mxu1 %v658_v1 }
  0x3b   :  { %531 = vmatprep.subr.bf16.mxu0 %v730_v7 }
  0x3d   :  { %583 = vmatpush3.bf16.msra.mxu1 %v736_v8  ;;  %v445_v8 = vld [vmem:[%s896_s2] sm:$0x3] }
  0x3e   :  { %532 = vmatpush3.bf16.msra.mxu0 %v743_v9  ;;  %584 = vmatprep.subr.bf16.mxu1 %v658_v1 }
  0x3f   :  { %533 = vmatprep.subr.bf16.mxu0 %v749_v10 }
  0x41   :  { %585 = vmatpush3.bf16.msra.mxu1 %v755_v11 }
  0x42   :  { %534 = vmatpush3.bf16.msra.mxu0 %v762_v12  ;;  %586 = vmatprep.subr.bf16.mxu1 %v658_v1 }
  0x43   :  { %535 = vmatprep.subr.bf16.mxu0 %v768_v13 }
  0x45   :  { %587 = vmatpush3.bf16.msra.mxu1 %v774_v14 }
  0x46   :  { %536 = vmatpush3.bf16.msra.mxu0 %v781_v15  ;;  %588 = vmatprep.subr.bf16.mxu1 %v658_v1 }
  0x47   :  { %537 = vmatprep.subr.bf16.mxu0 %v787_v16 }
  0x49   :  { %589 = vmatpush3.bf16.msra.mxu1 %v793_v17 }
  0x4a   :  { %538 = vmatpush3.bf16.msra.mxu0 %v800_v18  ;;  %590 = vmatprep.subr.bf16.mxu1 %v658_v1 }
  0x4b   :  { %539 = vmatprep.subr.bf16.mxu0 %v806_v19 }
  0x4d   :  { %591 = vmatpush3.bf16.msra.mxu1 %v811_v21 }
  0x4e   :  { %540 = vmatpush3.bf16.msra.mxu0 %v817_v22  ;;  %592 = vmatprep.subr.bf16.mxu1 %v658_v1 }
  0x4f   :  { %541 = vmatprep.subr.bf16.mxu0 %v831_v25 }
  0x51   :  { %593 = vmatpush3.bf16.msra.mxu1 %v837_v30 }
  0x52   :  { %542 = vmatpush3.bf16.msra.mxu0 %v633_v33 }
  0x54   :  { %595 = vmatmul.mubr.bf16.vlgmr.msra.gmra.mrb[0].mxu1 %v45_v40 }
  0x55   :  { %398 = vmatmul.mubr.bf16.vlgmr.msra.gmra.mrb[4].mxu0 %v43_v39 }
 0x108   :  { %v512_v57 = vpop.f32.mrb[0].mxu0 }
 0x109   :  { %v513_v58 = vpop.f32.mrb[1].mxu0 }
 0x10a   :  { %v514_v59 = vadd.f32 %v513_v58, %v512_v57  ;;  %v515_v60 = vpop.f32.mrb[2].mxu0 }
 0x10b   :  { %v516_v61 = vpop.f32.mrb[3].mxu0 }
 0x127   :  { %v439_v62 = vpop.f32.mrb[0].mxu1 }
 0x128   :  { %v543_v63 = vpop.f32.mrb[4].mxu0  ;;  %v596_v0 = vpop.f32.mrb[1].mxu1 }
 0x129   :  { %v544_v2 = vpop.f32.mrb[5].mxu0  ;;  %v442_v3 = vpop.f32.mrb[2].mxu1 }
 0x12a   :  { %v545_v4 = vadd.f32 %v544_v2, %v543_v63  ;;  %v546_v5 = vpop.f32.mrb[6].mxu0  ;;  %v597_v1 = vpop.f32.mrb[3].mxu1 }
 0x12b   :  { %v547_v6 = vpop.f32.mrb[7].mxu0 }
 0x12c   :  { %v598_v7 = vadd.f32 %v545_v4, %v514_v59 }
 0x12e   :  { %v599_v9 = vadd.f32 %v598_v7, %v439_v62 }
 0x130   :  { %v446_v10 = vmul.f32 %v599_v9, %v445_v8 }
 0x132   :  { %448 = vrot.lane.b32.xlu0 %v446_v10, %s661_s14 }
 0x136   :  { %452 = vrot.lane.b32.xlu0 %v446_v10, %s662_s15 }
 0x1a4   :  { %v449_v11 = vpop.permute.xlu0 %448 }
 0x1a5   :  { %v451_v12 = vadd.f32 %v449_v11, %v446_v10 }
 0x1a8   :  { %v453_v13 = vpop.permute.xlu0 %452 }
 0x1a9   :  { %v455_v14 = vadd.f32 %v453_v13, %v451_v12 }
 0x1ab   :  { %457 = vst.msk [vmem:[#allocation2] sm:$0x3] %vm456_vm1, %v455_v14 }
 0x1ac   :  { %645 = shalt.err (!%p642_p4)
}
 0x1ad   :  { %s646_s20 = scalar_lea.hbm %s898_s4, 32 }
 0x1ae   :  { %p647_p5 = scmp.ne.s32.totalorder %s898_s4, %s646_s20  ;;  %p650_p6 = scmp.lt.u32.totalorder %s646_s20, %s898_s4 }
 0x1b0   :  { %p652_p7 = pnand %p650_p6, %p647_p5 }
 0x1b2   :  { %655 = shalt.err (!%p652_p7)
}
 0x1b3   :  { %467 = dma.vmem_to_hbm [thread:$0]  %s465_s17, 32, %s898_s4, [#allocation3]  }
 0x1b4   :  { %656 = dma.done.wait [#allocation3], 32  }
 0x1b5   :  { %657 = vsyncadd [#allocation3], 4294967264 }
 0x1b6   :  { %471 = vsyncpa [#allocation3], 1 }

</bundles_post_ra>
